<compile_context>
chip_gen: v6e
topology: v6e:2x2x1
jax: 0.10.0
libtpu: 0.0.40
codegen_flags: <defaults>
</compile_context>

<pallas_src>
import functools

import jax
import jax.numpy as jnp
from jax.experimental import pallas as pl
from jax.experimental.pallas import tpu as pltpu


def _projection_head_kernel(x_ref, w_ref, b_ref, o_ref):
    # x_ref: (TB, Din), w_ref: (Din, Dp), b_ref: (1, Dp), o_ref: (TB, Dp)
    x = x_ref[...]
    w = w_ref[...]
    b = b_ref[...].astype(jnp.float32)

    # Linear projection on the MXU with f32 accumulation; bias add on the VPU.
    y = jnp.dot(x, w, preferred_element_type=jnp.float32) + b

    # F.normalize(p=2, dim=-1): y / max(||y||, 1e-12)
    #   == y * rsqrt(max(sum(y^2), 1e-24))    (rsqrt goes to the EUP slot).
    sq = jnp.sum(y * y, axis=-1, keepdims=True)
    inv_norm = jax.lax.rsqrt(jnp.maximum(sq, 1e-24))
    o_ref[...] = (y * inv_norm).astype(o_ref.dtype)


def _round_up(n, m):
    return ((n + m - 1) // m) * m


@functools.partial(
    jax.jit,
    static_argnames=("block_b", "min_steps", "compute_dtype", "vmem_limit_bytes"),
)
def projection_head_forward(
    x,
    w_t,
    b,
    *,
    block_b=1024,
    min_steps=4,
    compute_dtype=None,
    vmem_limit_bytes=None,
):
    """ProjectionHead forward.

    Args:
      x:   [B, Din]   activations.
      w_t: [Din, Dout] Linear weight, pre-transposed from PyTorch's [Dout, Din].
      b:   [Dout]     Linear bias.
      block_b: max batch-tile rows per grid step.
      min_steps: lower bound on grid steps for B > 16 (v7x: feed both TCs).
      compute_dtype: e.g. jnp.bfloat16 to feed bf16 operands to the MXU
        (accumulation stays f32). None keeps the input dtype (exact f32 path).
      vmem_limit_bytes: optional scoped-VMEM override (raise on v5e/v6e for
        bigger tiles; keep <= ~48 MiB on v7x's 64 MiB part).
    """
    B, Din = x.shape
    Dout = w_t.shape[1]
    out_dtype = x.dtype

    if compute_dtype is not None:
        x = x.astype(compute_dtype)
        w_t = w_t.astype(compute_dtype)

    # Lane-dense output: pad Dout up to a multiple of 128 with zero columns
    # (zero columns don't change the row norm); slice them off afterwards.
    Dp = Dout if Dout % 128 == 0 else _round_up(Dout, 128)
    if Dp != Dout:
        w_t = jnp.pad(w_t, ((0, 0), (0, Dp - Dout)))
        b = jnp.pad(b, (0, Dp - Dout))
    b2d = b.reshape(1, Dp).astype(jnp.float32)

    # --- batch-tile selection (VMEM-budget aware, multi-step for v7x) -------
    x_it = x.dtype.itemsize
    w_it = w_t.dtype.itemsize
    o_it = jnp.dtype(out_dtype).itemsize
    w_bytes = Din * Dp * w_it + Dp * 4          # single-buffered W + bias
    per_row = 2 * (Din * x_it + Dp * o_it)      # double-buffered x + out
    budget = int(0.75 * (vmem_limit_bytes if vmem_limit_bytes else 32 * 1024 * 1024))
    avail = budget - w_bytes
    if avail >= per_row * 16:
        tb_budget = max(16, (avail // per_row) // 16 * 16)
    else:
        tb_budget = 16
        # TODO(synk): if W alone blows the VMEM budget (huge Din*Dout), add a
        # Din grid axis ("arbitrary") with an f32 accumulator scratch instead
        # of holding W resident (and optionally fp8 W on v7x).

    if B <= 16:
        tb = B  # full-extent block satisfies the (8,128) rule by matching B
    else:
        tb_steps = _round_up(pl.cdiv(B, min_steps), 16)
        tb = max(16, min(block_b, tb_budget, tb_steps))
    grid_b = pl.cdiv(B, tb)

    cost = pl.CostEstimate(
        flops=2 * B * Din * Dp + 3 * B * Dp,
        transcendentals=B,  # one rsqrt per row
        bytes_accessed=(
            B * Din * x_it + Din * Dp * w_it + Dp * 4 + B * Dp * o_it
        ),
    )

    compiler_params = pltpu.CompilerParams(
        dimension_semantics=("parallel",),
        vmem_limit_bytes=vmem_limit_bytes,
    )

    out = pl.pallas_call(
        _projection_head_kernel,
        out_shape=jax.ShapeDtypeStruct((B, Dp), out_dtype),
        grid_spec=pl.GridSpec(
            grid=(grid_b,),
            in_specs=[
                # Batch-tiled activations: new block each grid step
                # (ragged last block is masked by Pallas).
                pl.BlockSpec((tb, Din), lambda i: (i, 0)),
                # Weight & bias: grid-invariant -> VMEM-resident, 1 buffer.
                pl.BlockSpec((Din, Dp), lambda i: (0, 0),
                             pipeline_mode=pl.Buffered(1)),
                pl.BlockSpec((1, Dp), lambda i: (0, 0),
                             pipeline_mode=pl.Buffered(1)),
            ],
            out_specs=pl.BlockSpec((tb, Dp), lambda i: (i, 0)),
        ),
        compiler_params=compiler_params,
        cost_estimate=cost,
    )(x, w_t, b2d)

    if Dp != Dout:
        out = out[:, :Dout]
    return out


def init_params(key, input_dim, projection_dim):
    """Deterministic init mimicking nn.Linear (uniform +/- 1/sqrt(fan_in))."""
    kw, kb = jax.random.split(key)
    bound = 1.0 / jnp.sqrt(jnp.float32(input_dim))
    # PyTorch weight is [Dout, Din]; store transposed [Din, Dout] for the kernel.
    w_t = jax.random.uniform(
        kw, (input_dim, projection_dim), jnp.float32, -bound, bound
    )
    b = jax.random.uniform(kb, (projection_dim,), jnp.float32, -bound, bound)
    return w_t, b


def _reference(x, w_t, b):
    y = x @ w_t + b
    return y / jnp.maximum(jnp.linalg.norm(y, axis=-1, keepdims=True), 1e-12)


if __name__ == "__main__":
    key = jax.random.PRNGKey(0)
    k_x, k_p, k_b = jax.random.split(key, 3)

    batch = 8
    input_dim = 32
    projection_dim = 16

    x = jax.random.normal(k_x, (batch, input_dim), jnp.float32)
    w_t, b = init_params(k_p, input_dim, projection_dim)

    # Small-batch path (single full-extent block, lane-padded Dout).
    out = jax.block_until_ready(projection_head_forward(x, w_t, b))
    ref = _reference(x, w_t, b)
    assert out.shape == (batch, projection_dim)
    assert jnp.allclose(out, ref, atol=1e-5, rtol=1e-5)

    # Tiled-grid path with a ragged last block (no pad/slice of x in HBM).
    big_b = 1000
    xb = jax.random.normal(k_b, (big_b, input_dim), jnp.float32)
    out_b = jax.block_until_ready(
        projection_head_forward(xb, w_t, b, block_b=512)
    )
    ref_b = _reference(xb, w_t, b)
    assert out_b.shape == (big_b, projection_dim)
    assert jnp.allclose(out_b, ref_b, atol=1e-5, rtol=1e-5)

    # bf16-operand MXU path (bandwidth optimization); looser tolerance.
    out_bf = jax.block_until_ready(
        projection_head_forward(xb, w_t, b, block_b=512,
                                compute_dtype=jnp.bfloat16)
    )
    assert out_bf.shape == (big_b, projection_dim)
    assert jnp.allclose(out_bf, ref_b, atol=3e-2, rtol=3e-2)

    print("KERNEL_OK")
</pallas_src>

<mosaic_0001>
module attributes {stable_mosaic.version = 11 : i64} {
  func.func @_projection_head_kernel(%arg0: i32, %arg1: memref<8x32xf32, #tpu.memory_space<vmem>>, %arg2: memref<32x128xf32, #tpu.memory_space<vmem>>, %arg3: memref<1x128xf32, #tpu.memory_space<vmem>>, %arg4: memref<8x128xf32, #tpu.memory_space<vmem>>) attributes {dimension_semantics = [#tpu.dimension_semantics<parallel>], iteration_bounds = array<i64: 1>, scalar_prefetch = 0 : i64, scratch_operands = 0 : i64, tpu.core_type = #tpu.core_type<tc>, window_params = [{transform_indices = @transform_0, window_bounds = array<i64: 8, 32>}, {pipeline_mode = #tpu.pipeline_mode<synchronous>, transform_indices = @transform_1, window_bounds = array<i64: 32, 128>}, {pipeline_mode = #tpu.pipeline_mode<synchronous>, transform_indices = @transform_2, window_bounds = array<i64: 1, 128>}, {transform_indices = @transform_3, window_bounds = array<i64: 8, 128>}]} {
    %c0 = arith.constant 0 : index
    %c0_0 = arith.constant 0 : index
    %0 = vector.load %arg1[%c0, %c0_0] : memref<8x32xf32, #tpu.memory_space<vmem>>, vector<8x32xf32>
    %c0_1 = arith.constant 0 : index
    %c0_2 = arith.constant 0 : index
    %1 = vector.load %arg2[%c0_1, %c0_2] : memref<32x128xf32, #tpu.memory_space<vmem>>, vector<32x128xf32>
    %c0_3 = arith.constant 0 : index
    %c0_4 = arith.constant 0 : index
    %2 = vector.load %arg3[%c0_3, %c0_4] : memref<1x128xf32, #tpu.memory_space<vmem>>, vector<1x128xf32>
    %cst = arith.constant dense<0.000000e+00> : vector<8x128xf32>
    %3 = tpu.matmul %0, %1, %cst {dimension_numbers = #tpu.dot_dimension_numbers<[1], [0], [0], [1], [0, 0, 1, 1], [], []>} : vector<8x32xf32>, vector<32x128xf32>, vector<8x128xf32> -> vector<8x128xf32>
    %4 = vector.broadcast %2 : vector<1x128xf32> to vector<8x128xf32>
    %5 = arith.addf %3, %4 : vector<8x128xf32>
    %6 = arith.mulf %5, %5 : vector<8x128xf32>
    %cst_5 = arith.constant dense<0.000000e+00> : vector<8xf32>
    %7 = vector.multi_reduction <add>, %6, %cst_5 [1] : vector<8x128xf32> to vector<8xf32>
    %8 = vector.shape_cast %7 : vector<8xf32> to vector<8x1xf32>
    %cst_6 = arith.constant 1.000000e-24 : f32
    %9 = vector.broadcast %cst_6 : f32 to vector<8x1xf32>
    %10 = arith.maximumf %8, %9 : vector<8x1xf32>
    %11 = math.rsqrt %10 : vector<8x1xf32>
    %12 = vector.broadcast %11 : vector<8x1xf32> to vector<8x128xf32>
    %13 = arith.mulf %5, %12 : vector<8x128xf32>
    %c0_7 = arith.constant 0 : index
    %c0_8 = arith.constant 0 : index
    %14 = vector.load %arg4[%c0_7, %c0_8] : memref<8x128xf32, #tpu.memory_space<vmem>>, vector<8x128xf32>
    tpu.vector_store %arg4[%c0_7, %c0_8], %13 {strides = array<i32>} : memref<8x128xf32, #tpu.memory_space<vmem>>, vector<8x128xf32>,
    return
  }
  func.func @transform_0(%arg0: i32) -> (i32, i32) {
    %c0_i32 = arith.constant 0 : i32
    %c0_i32_0 = arith.constant 0 : i32
    return %arg0, %c0_i32 : i32, i32
  }
  func.func @transform_1(%arg0: i32) -> (i32, i32) {
    %c0_i32 = arith.constant 0 : i32
    %c0_i32_0 = arith.constant 0 : i32
    %c0_i32_1 = arith.constant 0 : i32
    return %c0_i32, %c0_i32_0 : i32, i32
  }
  func.func @transform_2(%arg0: i32) -> (i32, i32) {
    %c0_i32 = arith.constant 0 : i32
    %c0_i32_0 = arith.constant 0 : i32
    %c0_i32_1 = arith.constant 0 : i32
    return %c0_i32, %c0_i32_0 : i32, i32
  }
  func.func @transform_3(%arg0: i32) -> (i32, i32) {
    %c0_i32 = arith.constant 0 : i32
    %c0_i32_0 = arith.constant 0 : i32
    return %arg0, %c0_i32 : i32, i32
  }
}

</mosaic_0001>

<bundles_post_ra>
// kernel: projection_head_forward.1
= control target key start
LH: loop header
LB: loop body
LE: loop exit
PB: predicated region body
PF: predicated region fallthrough
CT: control target
= control target key end

     0   :  { %v167_v1 = vmov 0.0   ;;  %vm168_vm0 = vmmov 0   ;;  %s211_s0 = inlined_call_operand.vmem [shape: f32[8,32], index: 0, kind: input, shape index: {}]   ;;  %s212_s1 = inlined_call_operand.vmem [shape: f32[32,128], index: 1, kind: input, shape index: {}]   ;;  %s213_s2 = inlined_call_operand.vmem [shape: f32[1,128], index: 2, kind: input, shape index: {}]   ;;  %s214_s3 = inlined_call_operand.hbm [shape: f32[8,128], index: 3, kind: output, shape index: {}]  }
   0x1   :  { %v19_v0 = vld [vmem:[%s212_s1 + $0x18] sm:$0xff]  ;;  %129 = vmatprep.subr.mxu0 %v167_v1  ;;  %v18_v2 = vld [vmem:[%s212_s1 + $0x10] sm:$0xff]  ;;  %137 = vmatprep.mubr.msk.f32.mxu0 %vm168_vm0, %v167_v1 }
   0x2   :  { %130 = vmatpush3.msra.mxu0 %v19_v0 }
   0x3   :  { %8 = vsyncpa [#allocation3], 0  ;;  %131 = vmatprep.subr.mxu0 %v167_v1  ;;  %v17_v3 = vld [vmem:[%s212_s1 + $0x8] sm:$0xff]  ;;  %v16_v4 = vld [vmem:[%s212_s1] sm:$0xff]  ;;  %vm27_vm1 = vcmask 261120   ;;  %s169_s1 = smov [#allocation2]  }
   0x4   :  { %132 = vmatpush3.msra.mxu0 %v18_v2  ;;  %v15_v5 = vld [vmem:[%s211_s0] sm:$0xff]  ;;  %s114_s24 = sshll.u32 %s169_s1, 4  ;;  %s115_s24 = int_to_ptr.vmem [resolvable:$true] %s114_s24 }
   0x5   :  { %133 = vmatprep.subr.mxu0 %v167_v1  ;;  %v122_v6 = vld [vmem:[%s213_s2] ss:$0 sm:$0xff]  ;;  %s145_s0 = scalar_lea.vmem %s115_s24, 128  ;;  %p150_p1 = scmp.lt.s32.totalorder %s115_s24, %s115_s24 }
   0x6   :  { %134 = vmatpush3.msra.mxu0 %v17_v3  ;;  %p146_p0 = scmp.ne.s32.totalorder %s115_s24, %s145_s0  ;;  %p151_p2 = scmp.lt.s32.totalorder %s145_s0, %s145_s0 }
   0x7   :  { %135 = vmatprep.subr.mxu0 %v167_v1 }
   0x8   :  { %136 = vmatpush3.msra.mxu0 %v16_v4  ;;  %p152_p3 = por %p151_p2, %p150_p1 }
   0x9   :  { %138 = vmatmul.mubr.msk.f32.vlgmr.msra.gmra.mxu0 %vm27_vm1, %v15_v5 }
   0xa   :  { %p153_p4 = pnand %p152_p3, %p146_p0 }
  0xc9   :  { %v97_v7 = vpop.f32.mrf.mxu0 }
  0xca   :  { %v98_v8 = vadd.f32 %v122_v6, %v97_v7 }
  0xcb   :  { %v139_v9 = vpop.f32.mrf.mxu0 }
  0xcc   :  { %v101_v10 = vmul.f32 %v98_v8, %v98_v8 }
  0xce   :  { %102 = vadd.xlane.f32.xlu0 %v101_v10 }
 0x157   :  { %v103_v11 = vpop.xlane.xlu0 %102 }
 0x158   :  { %v104_v12 = vmax.f32 %v103_v11, 1e-24 }
 0x15a   :  { %143 = vrsqrt.f32 %v104_v12 }
 0x167   :  { %v144_v13 = vpop.eup %143 }
 0x168   :  { %v106_v14 = vmul.f32 %v144_v13, %v98_v8 }
 0x16a   :  { %107 = vst [vmem:[#allocation2] sm:$0xff] %v106_v14 }
 0x16b   :  { %156 = shalt.err (!%p153_p4)
}
 0x16c   :  { %117 = dma.vmem_to_hbm [thread:$0]  %s115_s24, 128, %s214_s3, [#allocation3]  }
 0x16d   :  { %165 = dma.done.wait [#allocation3], 128  }
 0x16e   :  { %166 = vsyncadd [#allocation3], 4294967168 }
 0x16f   :  { %121 = vsyncpa [#allocation3], 1 }

</bundles_post_ra>
